<compile_context>
chip_gen: v7x
topology: tpu7x:2x2x1
jax: 0.10.0
libtpu: 0.0.40
codegen_flags: <defaults>
</compile_context>

<pallas_src>
import math
import functools

import jax
import jax.numpy as jnp
from jax.experimental import pallas as pl
from jax.experimental.pallas import tpu as pltpu


DIM_MODEL = 32
MAX_LEN = 64
DROPOUT_P = 0.1

LANES = 128                    # TPU vreg lane width
TARGET_BLOCK_BYTES = 1 << 20   # ~1 MiB per stream per grid step (~85%+ of HBM roofline)
MAX_PERIODIC_LANES = 4096      # give up on the lane-periodic PE trick past this


def make_pos_encoding(dim_model: int, max_len: int) -> jnp.ndarray:
    """Deterministic sin/cos table, identical to the torch __init__ buffer
    (stored as (max_len, dim_model); batch broadcast handled by the kernel)."""
    positions = jnp.arange(max_len, dtype=jnp.float32)[:, None]          # (L, 1)
    division_term = jnp.exp(
        jnp.arange(0, dim_model, 2, dtype=jnp.float32)
        * (-math.log(10000.0) / dim_model)
    )                                                                    # (D/2,)
    pe = jnp.zeros((max_len, dim_model), dtype=jnp.float32)
    pe = pe.at[:, 0::2].set(jnp.sin(positions * division_term))
    pe = pe.at[:, 1::2].set(jnp.cos(positions * division_term))
    return pe


def _cdiv(a: int, b: int) -> int:
    return -(-a // b)


def _pos_enc_kernel(seed_ref, x_ref, pe_ref, o_ref, *, dropout_p, train):
    # seed_ref: (1,) int32 in SMEM
    # x_ref / pe_ref / o_ref: (S, tc) lane-dense tiles in VMEM
    # Add in f32 (torch adds in fp32); only the store narrows the dtype.
    y = x_ref[...].astype(jnp.float32) + pe_ref[...].astype(jnp.float32)

    if train and dropout_p > 0.0:
        pid = pl.program_id(0)
        rows, lanes = y.shape
        # Per-(call, block) offset: one scalar op chain, hoisted off the VPU.
        base = (seed_ref[0].astype(jnp.uint32) * jnp.uint32(0x9E3779B9)
                + (pid * (rows * lanes)).astype(jnp.uint32))
        # Counter-based hash PRNG (pure jnp integer ops -> lowers on Mosaic and
        # in interpret mode).  Two multiply rounds: cheaper than murmur3 fmix
        # while keeping the drop mask ~uniform and unique per element/block.
        row = jax.lax.broadcasted_iota(jnp.int32, y.shape, 0)
        col = jax.lax.broadcasted_iota(jnp.int32, y.shape, 1)
        h = (row * lanes + col).astype(jnp.uint32) + base
        h *= jnp.uint32(0x85EBCA6B)
        h ^= h >> 15
        h *= jnp.uint32(0xC2B2AE35)
        h ^= h >> 13
        # Integer threshold compare: P(drop) = round(p * 2^32) / 2^32
        thr = jnp.uint32(min(int(round(dropout_p * 4294967296.0)), 4294967295))
        keep = h >= thr
        scale = jnp.float32(1.0 / (1.0 - dropout_p))
        y = jnp.where(keep, y * scale, jnp.float32(0.0))

    o_ref[...] = y.astype(o_ref.dtype)


def positional_encoding_forward(token_embedding, pos_encoding, seed,
                                dropout_p=DROPOUT_P, train=True):
    """token_embedding: (seq_len, batch, dim_model)
       pos_encoding:    (max_len, dim_model) fp32 table
       seed:            (1,) int32 (only used when train and dropout_p > 0)"""
    S, B, D = token_embedding.shape
    dtype = token_embedding.dtype
    itemsize = jnp.dtype(dtype).itemsize
    lane_total = B * D

    pe = pos_encoding[:S].astype(dtype)                     # (S, D) — tiny

    # ---- lane-dense tiling over the flattened (S, B*D) view -----------------
    # PE repeats along the flattened B*D axis with period D, so if the lane
    # block width is a multiple of lcm(128, D) every lane block sees exactly
    # the same (S, tc) PE slab -> stream that tiny slab once instead of a full
    # (S, B, D) broadcast.
    base = 128 * D // math.gcd(128, D)                      # lcm(128, D)
    periodic = base <= MAX_PERIODIC_LANES
    if not periodic:
        # TODO(synk): huge/odd dim_model makes the lane-periodic PE slab too
        # wide; fall back to materializing the broadcast PE (one extra HBM pass).
        base = LANES

    lane_pad1 = _cdiv(lane_total, base) * base

    # ~1 MiB per stream per grid step, rounded down to the PE period; prefer
    # >= 2 blocks so the 'parallel' axis can split across v7x's two TCs.
    tc = max(base, (TARGET_BLOCK_BYTES // max(1, S * itemsize)) // base * base)
    tc = min(tc, lane_pad1)
    if tc == lane_pad1 and lane_pad1 >= 2 * base:
        tc = max(base, (lane_pad1 // (2 * base)) * base)

    lane_padded = _cdiv(lane_pad1, tc) * tc
    num_blocks = lane_padded // tc

    x2 = token_embedding.reshape(S, lane_total)
    if lane_padded != lane_total:
        x2 = jnp.pad(x2, ((0, 0), (0, lane_padded - lane_total)))

    if periodic:
        pe_in = jnp.tile(pe, (1, tc // D))                  # (S, tc), loaded once
        pe_map = lambda j: (0, 0)                           # resident in VMEM
    else:
        pe_full = jnp.broadcast_to(pe[:, None, :], (S, B, D)).reshape(S, lane_total)
        pe_in = jnp.pad(pe_full, ((0, 0), (0, lane_padded - lane_total)))
        pe_map = lambda j: (0, j)

    kernel = functools.partial(_pos_enc_kernel,
                               dropout_p=float(dropout_p), train=bool(train))

    out2 = pl.pallas_call(
        kernel,
        out_shape=jax.ShapeDtypeStruct((S, lane_padded), dtype),
        grid=(num_blocks,),
        in_specs=[
            pl.BlockSpec(memory_space=pltpu.MemorySpace.SMEM),   # seed scalar
            pl.BlockSpec((S, tc), lambda j: (0, j)),             # x lane block
            pl.BlockSpec((S, tc), pe_map),                       # PE slab
        ],
        out_specs=pl.BlockSpec((S, tc), lambda j: (0, j)),
        compiler_params=pltpu.CompilerParams(
            dimension_semantics=("parallel",)),                  # 2-TC split on v7x
    )(seed, x2, pe_in)

    if lane_padded != lane_total:
        out2 = out2[:, :lane_total]
    return out2.reshape(S, B, D)


if __name__ == "__main__":
    pe_table = make_pos_encoding(DIM_MODEL, MAX_LEN)
    seed = jnp.array([42], dtype=jnp.int32)
    scale = 1.0 / (1.0 - DROPOUT_P)

    # ---- small demo shape: seq=8, batch=2, dim=32 (single block, padded lanes)
    SEQ, BATCH = 8, 2
    x = jax.random.normal(jax.random.PRNGKey(0), (SEQ, BATCH, DIM_MODEL), jnp.float32)
    ref = x + pe_table[:SEQ][:, None, :]

    out_eval = jax.block_until_ready(
        positional_encoding_forward(x, pe_table, seed, DROPOUT_P, train=False))
    assert out_eval.shape == (SEQ, BATCH, DIM_MODEL)
    assert jnp.allclose(out_eval, ref, atol=1e-6, rtol=1e-6)

    out_train = jax.block_until_ready(
        positional_encoding_forward(x, pe_table, seed, DROPOUT_P, train=True))
    assert out_train.shape == (SEQ, BATCH, DIM_MODEL)
    # every element is either exactly dropped (0) or kept-and-rescaled
    ok = jnp.isclose(out_train, 0.0) | jnp.isclose(out_train, ref * scale,
                                                   atol=1e-5, rtol=1e-5)
    assert bool(jnp.all(ok))
    drop_frac = float(jnp.mean((out_train == 0.0).astype(jnp.float32)))
    assert 0.0 < drop_frac < 0.35  # ~10% expected

    # ---- ragged lane count: B*D=160 -> padded to 256, 2 lane blocks ----------
    S1, B1 = 16, 5
    x1 = jax.random.normal(jax.random.PRNGKey(1), (S1, B1, DIM_MODEL), jnp.float32)
    ref1 = x1 + pe_table[:S1][:, None, :]
    out1 = jax.block_until_ready(
        positional_encoding_forward(x1, pe_table, seed, DROPOUT_P, train=False))
    assert jnp.allclose(out1, ref1, atol=1e-6, rtol=1e-6)

    # ---- larger shape exercising the multi-block pipelined grid path ---------
    S2, B2 = 64, 64
    x2 = jax.random.normal(jax.random.PRNGKey(2), (S2, B2, DIM_MODEL), jnp.float32)
    ref2 = x2 + pe_table[:S2][:, None, :]
    out2_eval = jax.block_until_ready(
        positional_encoding_forward(x2, pe_table, seed, DROPOUT_P, train=False))
    assert jnp.allclose(out2_eval, ref2, atol=1e-6, rtol=1e-6)
    out2_train = jax.block_until_ready(
        positional_encoding_forward(x2, pe_table, seed, DROPOUT_P, train=True))
    ok2 = jnp.isclose(out2_train, 0.0) | jnp.isclose(out2_train, ref2 * scale,
                                                     atol=1e-5, rtol=1e-5)
    assert bool(jnp.all(ok2))
    drop2 = float(jnp.mean((out2_train == 0.0).astype(jnp.float32)))
    assert 0.05 < drop2 < 0.20

    # ---- bf16 path: halves HBM traffic; add still done in f32 in-kernel ------
    xb = x2.astype(jnp.bfloat16)
    refb = (xb.astype(jnp.float32)
            + pe_table[:S2][:, None, :].astype(jnp.bfloat16).astype(jnp.float32))
    outb = jax.block_until_ready(
        positional_encoding_forward(xb, pe_table, seed, DROPOUT_P, train=False))
    assert outb.dtype == jnp.bfloat16
    assert jnp.allclose(outb.astype(jnp.float32), refb, atol=2e-2, rtol=2e-2)

    print("KERNEL_OK")
</pallas_src>

<mosaic_0001>
module attributes {stable_mosaic.version = 11 : i64} {
  func.func @_pos_enc_kernel(%arg0: i32, %arg1: memref<1xi32, #tpu.memory_space<smem>>, %arg2: memref<8x128xf32, #tpu.memory_space<vmem>>, %arg3: memref<8x128xf32, #tpu.memory_space<vmem>>, %arg4: memref<8x128xf32, #tpu.memory_space<vmem>>) attributes {dimension_semantics = [#tpu.dimension_semantics<parallel>], iteration_bounds = array<i64: 1>, scalar_prefetch = 0 : i64, scratch_operands = 0 : i64, tpu.core_type = #tpu.core_type<tc>, window_params = [{transform_indices = @transform_0, window_bounds = array<i64: 1>}, {transform_indices = @transform_1, window_bounds = array<i64: 8, 128>}, {pipeline_mode = #tpu.pipeline_mode<synchronous>, transform_indices = @transform_2, window_bounds = array<i64: 8, 128>}, {transform_indices = @transform_3, window_bounds = array<i64: 8, 128>}]} {
    %c0 = arith.constant 0 : index
    %c0_0 = arith.constant 0 : index
    %0 = vector.load %arg2[%c0, %c0_0] : memref<8x128xf32, #tpu.memory_space<vmem>>, vector<8x128xf32>
    %c0_1 = arith.constant 0 : index
    %c0_2 = arith.constant 0 : index
    %1 = vector.load %arg3[%c0_1, %c0_2] : memref<8x128xf32, #tpu.memory_space<vmem>>, vector<8x128xf32>
    %2 = arith.addf %0, %1 : vector<8x128xf32>
    %c0_3 = arith.constant 0 : index
    %c0_4 = arith.constant 0 : index
    %3 = vector.load %arg4[%c0_3, %c0_4] : memref<8x128xf32, #tpu.memory_space<vmem>>, vector<8x128xf32>
    tpu.vector_store %arg4[%c0_3, %c0_4], %2 {strides = array<i32>} : memref<8x128xf32, #tpu.memory_space<vmem>>, vector<8x128xf32>,
    return
  }
  func.func @transform_0(%arg0: i32) -> i32 {
    %c0_i32 = arith.constant 0 : i32
    %c0_i32_0 = arith.constant 0 : i32
    return %c0_i32 : i32
  }
  func.func @transform_1(%arg0: i32) -> (i32, i32) {
    %c0_i32 = arith.constant 0 : i32
    %c0_i32_0 = arith.constant 0 : i32
    return %c0_i32, %arg0 : i32, i32
  }
  func.func @transform_2(%arg0: i32) -> (i32, i32) {
    %c0_i32 = arith.constant 0 : i32
    %c0_i32_0 = arith.constant 0 : i32
    %c0_i32_1 = arith.constant 0 : i32
    return %c0_i32, %c0_i32_0 : i32, i32
  }
  func.func @transform_3(%arg0: i32) -> (i32, i32) {
    %c0_i32 = arith.constant 0 : i32
    %c0_i32_0 = arith.constant 0 : i32
    return %c0_i32, %arg0 : i32, i32
  }
}

</mosaic_0001>

<bundles_post_ra>
// kernel: tpu_custom_call.1
= control target key start
LH: loop header
LB: loop body
LE: loop exit
PB: predicated region body
PF: predicated region fallthrough
CT: control target
= control target key end

     0   :  { %9 = vsyncpa [#allocation4], 0  ;;  %s194_s0 = inlined_call_operand.<no memory space> [shape: s32[1], index: 0, kind: input, shape index: {}]   ;;  %s195_s1 = inlined_call_operand.hbm [shape: f32[8,128], index: 1, kind: input, shape index: {}]   ;;  %s196_s2 = inlined_call_operand.hbm [shape: f32[8,128], index: 2, kind: input, shape index: {}]   ;;  %s197_s3 = inlined_call_operand.hbm [shape: f32[8,128], index: 3, kind: output, shape index: {}]  }
   0x1   :  { %10 = vsyncpa [#allocation7], 0 }
   0x2   :  { %11 = vsyncpa [#allocation5], 0  ;;  %s135_s12 = smov [#allocation3]   ;;  %s136_s14 = smov [#allocation6]  }
   0x3   :  { %s20_s13 = sshll.u32 %s135_s12, 4  ;;  %s30_s15 = sshll.u32 %s136_s14, 4  ;;  %s21_s13 = int_to_ptr.vmem [resolvable:$true] %s20_s13  ;;  %s31_s15 = int_to_ptr.vmem [resolvable:$true] %s30_s15 }
   0x4   :  { %s63_s17 = scalar_lea.hbm %s195_s1, 128 }
   0x5   :  { %p64_p0 = scmp.ne.s32.totalorder %s195_s1, %s63_s17  ;;  %p67_p1 = scmp.lt.u32.totalorder %s63_s17, %s195_s1 }
   0x7   :  { %p69_p2 = pnand %p67_p1, %p64_p0 }
   0x9   :  { %72 = shalt.err (!%p69_p2)
}
   0xa   :  { %s73_s22 = scalar_lea.vmem %s21_s13, 128  ;;  %p78_p4 = scmp.lt.s32.totalorder %s21_s13, %s21_s13 }
   0xb   :  { %p74_p3 = scmp.ne.s32.totalorder %s21_s13, %s73_s22  ;;  %p79_p5 = scmp.lt.s32.totalorder %s73_s22, %s73_s22 }
   0xd   :  { %p80_p6 = por %p79_p5, %p78_p4 }
   0xf   :  { %p81_p7 = pnand %p80_p6, %p74_p3 }
  0x11   :  { %84 = shalt.err (!%p81_p7)
}
  0x12   :  { %23 = dma.hbm_to_vmem [thread:$0]  %s195_s1, 128, %s21_s13, [#allocation4]  }
  0x13   :  { %s85_s27 = scalar_lea.hbm %s196_s2, 128 }
  0x14   :  { %p86_p8 = scmp.ne.s32.totalorder %s196_s2, %s85_s27  ;;  %p89_p9 = scmp.lt.u32.totalorder %s85_s27, %s196_s2 }
  0x16   :  { %p91_p10 = pnand %p89_p9, %p86_p8 }
  0x18   :  { %94 = shalt.err (!%p91_p10)
}
  0x19   :  { %s95_s5 = scalar_lea.vmem %s31_s15, 128  ;;  %p100_p12 = scmp.lt.s32.totalorder %s31_s15, %s31_s15 }
  0x1a   :  { %p96_p11 = scmp.ne.s32.totalorder %s31_s15, %s95_s5  ;;  %p101_p13 = scmp.lt.s32.totalorder %s95_s5, %s95_s5 }
  0x1c   :  { %p102_p0 = por %p101_p13, %p100_p12 }
  0x1e   :  { %p103_p1 = pnand %p102_p0, %p96_p11 }
  0x20   :  { %106 = shalt.err (!%p103_p1)
}
  0x21   :  { %33 = dma.hbm_to_vmem [thread:$0]  %s196_s2, 128, %s31_s15, [#allocation7]  }
  0x22   :  { %129 = dma.done.wait [#allocation4], 128  }
  0x23   :  { %130 = vsyncadd [#allocation4], 4294967168 }
  0x24   :  { %131 = dma.done.wait [#allocation7], 128  }
  0x25   :  { %132 = vsyncadd [#allocation7], 4294967168  ;;  %s137_s7 = smov [#allocation8]   ;;  %v40_v0 = vld [vmem:[#allocation3] sm:$0xff]  ;;  %v41_v1 = vld [vmem:[#allocation6] sm:$0xff] }
  0x26   :  { %s50_s8 = sshll.u32 %s137_s7, 4  ;;  %v42_v2 = vadd.f32 %v41_v1, %v40_v0  ;;  %s51_s8 = int_to_ptr.vmem [resolvable:$true] %s50_s8 }
  0x27   :  { %s107_s9 = scalar_lea.vmem %s51_s8, 128  ;;  %p112_p3 = scmp.lt.s32.totalorder %s51_s8, %s51_s8 }
  0x28   :  { %43 = vst [vmem:[#allocation8] sm:$0xff] %v42_v2  ;;  %p108_p2 = scmp.ne.s32.totalorder %s51_s8, %s107_s9  ;;  %p113_p4 = scmp.lt.s32.totalorder %s107_s9, %s107_s9 }
  0x2a   :  { %p114_p5 = por %p113_p4, %p112_p3 }
  0x2c   :  { %p115_p6 = pnand %p114_p5, %p108_p2 }
  0x2e   :  { %118 = shalt.err (!%p115_p6)
}
  0x2f   :  { %s119_s11 = scalar_lea.hbm %s197_s3, 128 }
  0x30   :  { %p120_p7 = scmp.ne.s32.totalorder %s197_s3, %s119_s11  ;;  %p123_p8 = scmp.lt.u32.totalorder %s119_s11, %s197_s3 }
  0x32   :  { %p125_p9 = pnand %p123_p8, %p120_p7 }
  0x34   :  { %128 = shalt.err (!%p125_p9)
}
  0x35   :  { %53 = dma.vmem_to_hbm [thread:$0]  %s51_s8, 128, %s197_s3, [#allocation5]  }
  0x36   :  { %133 = dma.done.wait [#allocation5], 128  }
  0x37   :  { %134 = vsyncadd [#allocation5], 4294967168 }
  0x38   :  { %57 = vsyncpa [#allocation4], 1 }
  0x39   :  { %58 = vsyncpa [#allocation7], 1 }
  0x3a   :  { %59 = vsyncpa [#allocation5], 1 }

</bundles_post_ra>
